<compile_context>
chip_gen: v7x
topology: tpu7x:2x2x1
jax: 0.10.0
libtpu: 0.0.40
codegen_flags: <defaults>
</compile_context>

<pallas_src>
import jax
import jax.numpy as jnp
import numpy as np
from jax.experimental import pallas as pl
from jax.experimental.pallas import tpu as pltpu


# ---------------------------------------------------------------------------
# Kernels
# ---------------------------------------------------------------------------
def _dwt_fused_kernel(x_ref, out_ref):
    # x_ref:   (1, Rb, 2*W)   lane axis = [even input row | odd input row]
    # out_ref: (1, 3, Rb, Wh) subbands [HL, LH, HH]
    two_w = x_ref.shape[2]
    w = two_w // 2
    wh = w // 2
    # Four parity quadrants via lane-strided loads (deinterleave fused into the
    # load path -- no HBM intermediate, XLU/load slots have slack here).
    x1 = x_ref[0, :, pl.ds(0, wh, stride=2)]        # even row, even col
    x3 = x_ref[0, :, pl.ds(1, wh, stride=2)]        # even row, odd col
    x2 = x_ref[0, :, pl.ds(w, wh, stride=2)]        # odd row,  even col
    x4 = x_ref[0, :, pl.ds(w + 1, wh, stride=2)]    # odd row,  odd col
    d = x4 - x1
    e = x3 - x2
    out_ref[0, 0] = (d + e) * 0.5                   # x_HL = -x1 - x2 + x3 + x4 (pre-/2)
    out_ref[0, 1] = (d - e) * 0.5                   # x_LH = -x1 + x2 - x3 + x4
    out_ref[0, 2] = ((x1 + x4) - (x2 + x3)) * 0.5   # x_HH =  x1 - x2 - x3 + x4


def _dwt_presplit_kernel(xq_ref, out_ref):
    # Conservative fallback: quadrants already split by XLA in the wrapper.
    # xq_ref: (1, 4, Rb, Wh), out_ref: (1, 3, Rb, Wh)
    x1 = xq_ref[0, 0]
    x2 = xq_ref[0, 1]
    x3 = xq_ref[0, 2]
    x4 = xq_ref[0, 3]
    d = x4 - x1
    e = x3 - x2
    out_ref[0, 0] = (d + e) * 0.5
    out_ref[0, 1] = (d - e) * 0.5
    out_ref[0, 2] = ((x1 + x4) - (x2 + x3)) * 0.5


# ---------------------------------------------------------------------------
# Wrappers
# ---------------------------------------------------------------------------
def _pick_row_block(rows, width, max_bytes=2 * 1024 * 1024):
    """Largest multiple-of-8 divisor of `rows` whose f32 input block
    (rb x 2*width) stays under `max_bytes`; falls back to the full row axis
    (a full-extent block is always layout-legal)."""
    cap = max(1, min(rows, max_bytes // (8 * width)))
    for rb in range(cap, 0, -1):
        if rows % rb == 0 and rb % 8 == 0:
            return rb
    return rows


_COMPILER_PARAMS = pltpu.CompilerParams(
    dimension_semantics=("parallel", "parallel"),
    vmem_limit_bytes=40 * 1024 * 1024,
)


def _dwt_fused(x):
    B, C, H, W = x.shape
    Hh, Wh = H // 2, W // 2
    rows = C * Hh
    # Free (bit-identical) reshape: row q = c*Hh + h/2, lanes = [even row | odd row].
    xv = x.reshape(B, rows, 2 * W)
    rb = _pick_row_block(rows, W)
    grid = (B, rows // rb)
    out = pl.pallas_call(
        _dwt_fused_kernel,
        out_shape=jax.ShapeDtypeStruct((B, 3, rows, Wh), x.dtype),
        grid=grid,
        in_specs=[pl.BlockSpec((1, rb, 2 * W), lambda b, i: (b, i, 0))],
        out_specs=pl.BlockSpec((1, 3, rb, Wh), lambda b, i: (b, 0, i, 0)),
        compiler_params=_COMPILER_PARAMS,
    )(xv)
    # Free reshape: (B, 3, C*Hh, Wh) already has exactly the memory layout of
    # torch.cat((HL, LH, HH), dim=1) viewed as (B, 3*C, Hh, Wh).
    return out.reshape(B, 3 * C, Hh, Wh)


def _dwt_presplit(x):
    # Fallback path: parity split done by XLA (one extra HBM round trip); the
    # Haar combine, tiling, lane-dense output and megacore grid stay in Pallas.
    B, C, H, W = x.shape
    Hh, Wh = H // 2, W // 2
    rows = C * Hh
    xr = x.reshape(B, C, Hh, 2, Wh, 2)
    xq = jnp.stack(
        [xr[:, :, :, 0, :, 0], xr[:, :, :, 1, :, 0],
         xr[:, :, :, 0, :, 1], xr[:, :, :, 1, :, 1]],
        axis=1,
    ).reshape(B, 4, rows, Wh)
    rb = _pick_row_block(rows, W)
    grid = (B, rows // rb)
    out = pl.pallas_call(
        _dwt_presplit_kernel,
        out_shape=jax.ShapeDtypeStruct((B, 3, rows, Wh), x.dtype),
        grid=grid,
        in_specs=[pl.BlockSpec((1, 4, rb, Wh), lambda b, i: (b, 0, i, 0))],
        out_specs=pl.BlockSpec((1, 3, rb, Wh), lambda b, i: (b, 0, i, 0)),
        compiler_params=_COMPILER_PARAMS,
    )(xq)
    return out.reshape(B, 3 * C, Hh, Wh)


def dwt(x):
    B, C, H, W = x.shape
    if H % 2 or W % 2:
        # PyTorch's 0::2 / 1::2 slicing silently truncates odd extents.
        x = x[:, :, : (H // 2) * 2, : (W // 2) * 2]
    try:
        return _dwt_fused(x)
    except Exception:
        # TODO(synk): remove this fallback once lane-strided ref loads
        # (pl.ds(..., stride=2)) are confirmed on every targeted Mosaic
        # version; the fused path above is the intended fast path.
        return _dwt_presplit(x)


def dwt_ref(x):
    # Pure-JAX reference mirroring the PyTorch dwt_init exactly.
    x01 = x[:, :, 0::2, :] / 2
    x02 = x[:, :, 1::2, :] / 2
    x1 = x01[:, :, :, 0::2]
    x2 = x02[:, :, :, 0::2]
    x3 = x01[:, :, :, 1::2]
    x4 = x02[:, :, :, 1::2]
    x_HL = -x1 - x2 + x3 + x4
    x_LH = -x1 + x2 - x3 + x4
    x_HH = x1 - x2 - x3 + x4
    return jnp.concatenate((x_HL, x_LH, x_HH), axis=1)


if __name__ == "__main__":
    key = jax.random.PRNGKey(0)
    k1, k2 = jax.random.split(key)

    # Primary small shape.
    x = jax.random.normal(k1, (2, 4, 16, 16), dtype=jnp.float32)
    y = jax.block_until_ready(dwt(x))
    y_ref = jax.block_until_ready(dwt_ref(x))
    assert y.shape == (2, 12, 8, 8), y.shape
    np.testing.assert_allclose(np.asarray(y), np.asarray(y_ref),
                               rtol=1e-6, atol=1e-5)

    # Non-square shape with a lane width that is not a multiple of 128.
    x2 = jax.random.normal(k2, (1, 3, 32, 40), dtype=jnp.float32)
    y2 = jax.block_until_ready(dwt(x2))
    y2_ref = jax.block_until_ready(dwt_ref(x2))
    assert y2.shape == (1, 9, 16, 20), y2.shape
    np.testing.assert_allclose(np.asarray(y2), np.asarray(y2_ref),
                               rtol=1e-6, atol=1e-5)

    print("KERNEL_OK")
</pallas_src>

<mosaic_0001>
module attributes {stable_mosaic.version = 11 : i64} {
  func.func @_dwt_fused_kernel(%arg0: i32, %arg1: i32, %arg2: memref<1x32x32xf32, #tpu.memory_space<vmem>>, %arg3: memref<1x3x32x8xf32, #tpu.memory_space<vmem>>) attributes {dimension_semantics = [#tpu.dimension_semantics<parallel>, #tpu.dimension_semantics<parallel>], iteration_bounds = array<i64: 2, 1>, scalar_prefetch = 0 : i64, scratch_operands = 0 : i64, tpu.core_type = #tpu.core_type<tc>, window_params = [{transform_indices = @transform_0, window_bounds = array<i64: 1, 32, 32>}, {transform_indices = @transform_1, window_bounds = array<i64: 1, 3, 32, 8>}]} {
    %c0 = arith.constant 0 : index
    %c0_0 = arith.constant 0 : index
    %c0_1 = arith.constant 0 : index
    %0 = tpu.strided_load %arg2[%c0, %c0_0, %c0_1] {strides = array<i32: 1, 1, 2>} : memref<1x32x32xf32, #tpu.memory_space<vmem>>, vector<1x32x8xf32>
    %1 = vector.shape_cast %0 : vector<1x32x8xf32> to vector<32x8xf32>
    %c0_2 = arith.constant 0 : index
    %c0_3 = arith.constant 0 : index
    %c1 = arith.constant 1 : index
    %2 = tpu.strided_load %arg2[%c0_2, %c0_3, %c1] {strides = array<i32: 1, 1, 2>} : memref<1x32x32xf32, #tpu.memory_space<vmem>>, vector<1x32x8xf32>
    %3 = vector.shape_cast %2 : vector<1x32x8xf32> to vector<32x8xf32>
    %c0_4 = arith.constant 0 : index
    %c0_5 = arith.constant 0 : index
    %c16 = arith.constant 16 : index
    %4 = tpu.strided_load %arg2[%c0_4, %c0_5, %c16] {strides = array<i32: 1, 1, 2>} : memref<1x32x32xf32, #tpu.memory_space<vmem>>, vector<1x32x8xf32>
    %5 = vector.shape_cast %4 : vector<1x32x8xf32> to vector<32x8xf32>
    %c0_6 = arith.constant 0 : index
    %c0_7 = arith.constant 0 : index
    %c17 = arith.constant 17 : index
    %6 = tpu.strided_load %arg2[%c0_6, %c0_7, %c17] {strides = array<i32: 1, 1, 2>} : memref<1x32x32xf32, #tpu.memory_space<vmem>>, vector<1x32x8xf32>
    %7 = vector.shape_cast %6 : vector<1x32x8xf32> to vector<32x8xf32>
    %8 = arith.subf %7, %1 : vector<32x8xf32>
    %9 = arith.subf %3, %5 : vector<32x8xf32>
    %10 = arith.addf %8, %9 : vector<32x8xf32>
    %cst = arith.constant 5.000000e-01 : f32
    %11 = vector.broadcast %cst : f32 to vector<32x8xf32>
    %12 = arith.mulf %10, %11 : vector<32x8xf32>
    %c0_8 = arith.constant 0 : index
    %c0_9 = arith.constant 0 : index
    %c0_10 = arith.constant 0 : index
    %c0_11 = arith.constant 0 : index
    %13 = vector.load %arg3[%c0_8, %c0_9, %c0_10, %c0_11] : memref<1x3x32x8xf32, #tpu.memory_space<vmem>>, vector<1x1x32x8xf32>
    %14 = vector.shape_cast %13 : vector<1x1x32x8xf32> to vector<32x8xf32>
    %15 = vector.shape_cast %12 : vector<32x8xf32> to vector<1x1x32x8xf32>
    tpu.vector_store %arg3[%c0_8, %c0_9, %c0_10, %c0_11], %15 {strides = array<i32>} : memref<1x3x32x8xf32, #tpu.memory_space<vmem>>, vector<1x1x32x8xf32>,
    %16 = arith.subf %8, %9 : vector<32x8xf32>
    %cst_12 = arith.constant 5.000000e-01 : f32
    %17 = vector.broadcast %cst_12 : f32 to vector<32x8xf32>
    %18 = arith.mulf %16, %17 : vector<32x8xf32>
    %c0_13 = arith.constant 0 : index
    %c1_14 = arith.constant 1 : index
    %c0_15 = arith.constant 0 : index
    %c0_16 = arith.constant 0 : index
    %19 = vector.load %arg3[%c0_13, %c1_14, %c0_15, %c0_16] : memref<1x3x32x8xf32, #tpu.memory_space<vmem>>, vector<1x1x32x8xf32>
    %20 = vector.shape_cast %19 : vector<1x1x32x8xf32> to vector<32x8xf32>
    %21 = vector.shape_cast %18 : vector<32x8xf32> to vector<1x1x32x8xf32>
    tpu.vector_store %arg3[%c0_13, %c1_14, %c0_15, %c0_16], %21 {strides = array<i32>} : memref<1x3x32x8xf32, #tpu.memory_space<vmem>>, vector<1x1x32x8xf32>,
    %22 = arith.addf %1, %7 : vector<32x8xf32>
    %23 = arith.addf %5, %3 : vector<32x8xf32>
    %24 = arith.subf %22, %23 : vector<32x8xf32>
    %cst_17 = arith.constant 5.000000e-01 : f32
    %25 = vector.broadcast %cst_17 : f32 to vector<32x8xf32>
    %26 = arith.mulf %24, %25 : vector<32x8xf32>
    %c0_18 = arith.constant 0 : index
    %c2 = arith.constant 2 : index
    %c0_19 = arith.constant 0 : index
    %c0_20 = arith.constant 0 : index
    %27 = vector.load %arg3[%c0_18, %c2, %c0_19, %c0_20] : memref<1x3x32x8xf32, #tpu.memory_space<vmem>>, vector<1x1x32x8xf32>
    %28 = vector.shape_cast %27 : vector<1x1x32x8xf32> to vector<32x8xf32>
    %29 = vector.shape_cast %26 : vector<32x8xf32> to vector<1x1x32x8xf32>
    tpu.vector_store %arg3[%c0_18, %c2, %c0_19, %c0_20], %29 {strides = array<i32>} : memref<1x3x32x8xf32, #tpu.memory_space<vmem>>, vector<1x1x32x8xf32>,
    return
  }
  func.func @transform_0(%arg0: i32, %arg1: i32) -> (i32, i32, i32) {
    %c0_i32 = arith.constant 0 : i32
    %c0_i32_0 = arith.constant 0 : i32
    return %arg0, %arg1, %c0_i32 : i32, i32, i32
  }
  func.func @transform_1(%arg0: i32, %arg1: i32) -> (i32, i32, i32, i32) {
    %c0_i32 = arith.constant 0 : i32
    %c0_i32_0 = arith.constant 0 : i32
    %c0_i32_1 = arith.constant 0 : i32
    return %arg0, %c0_i32, %arg1, %c0_i32_0 : i32, i32, i32, i32
  }
}

module attributes {stable_mosaic.version = 11 : i64} {
  func.func @_dwt_presplit_kernel(%arg0: i32, %arg1: i32, %arg2: memref<1x4x32x8xf32, #tpu.memory_space<vmem>>, %arg3: memref<1x3x32x8xf32, #tpu.memory_space<vmem>>) attributes {dimension_semantics = [#tpu.dimension_semantics<parallel>, #tpu.dimension_semantics<parallel>], iteration_bounds = array<i64: 2, 1>, scalar_prefetch = 0 : i64, scratch_operands = 0 : i64, tpu.core_type = #tpu.core_type<tc>, window_params = [{transform_indices = @transform_0, window_bounds = array<i64: 1, 4, 32, 8>}, {transform_indices = @transform_1, window_bounds = array<i64: 1, 3, 32, 8>}]} {
    %c0 = arith.constant 0 : index
    %c0_0 = arith.constant 0 : index
    %c0_1 = arith.constant 0 : index
    %c0_2 = arith.constant 0 : index
    %0 = vector.load %arg2[%c0, %c0_0, %c0_1, %c0_2] : memref<1x4x32x8xf32, #tpu.memory_space<vmem>>, vector<1x1x32x8xf32>
    %1 = vector.shape_cast %0 : vector<1x1x32x8xf32> to vector<32x8xf32>
    %c0_3 = arith.constant 0 : index
    %c1 = arith.constant 1 : index
    %c0_4 = arith.constant 0 : index
    %c0_5 = arith.constant 0 : index
    %2 = vector.load %arg2[%c0_3, %c1, %c0_4, %c0_5] : memref<1x4x32x8xf32, #tpu.memory_space<vmem>>, vector<1x1x32x8xf32>
    %3 = vector.shape_cast %2 : vector<1x1x32x8xf32> to vector<32x8xf32>
    %c0_6 = arith.constant 0 : index
    %c2 = arith.constant 2 : index
    %c0_7 = arith.constant 0 : index
    %c0_8 = arith.constant 0 : index
    %4 = vector.load %arg2[%c0_6, %c2, %c0_7, %c0_8] : memref<1x4x32x8xf32, #tpu.memory_space<vmem>>, vector<1x1x32x8xf32>
    %5 = vector.shape_cast %4 : vector<1x1x32x8xf32> to vector<32x8xf32>
    %c0_9 = arith.constant 0 : index
    %c3 = arith.constant 3 : index
    %c0_10 = arith.constant 0 : index
    %c0_11 = arith.constant 0 : index
    %6 = vector.load %arg2[%c0_9, %c3, %c0_10, %c0_11] : memref<1x4x32x8xf32, #tpu.memory_space<vmem>>, vector<1x1x32x8xf32>
    %7 = vector.shape_cast %6 : vector<1x1x32x8xf32> to vector<32x8xf32>
    %8 = arith.subf %7, %1 : vector<32x8xf32>
    %9 = arith.subf %5, %3 : vector<32x8xf32>
    %10 = arith.addf %8, %9 : vector<32x8xf32>
    %cst = arith.constant 5.000000e-01 : f32
    %11 = vector.broadcast %cst : f32 to vector<32x8xf32>
    %12 = arith.mulf %10, %11 : vector<32x8xf32>
    %c0_12 = arith.constant 0 : index
    %c0_13 = arith.constant 0 : index
    %c0_14 = arith.constant 0 : index
    %c0_15 = arith.constant 0 : index
    %13 = vector.load %arg3[%c0_12, %c0_13, %c0_14, %c0_15] : memref<1x3x32x8xf32, #tpu.memory_space<vmem>>, vector<1x1x32x8xf32>
    %14 = vector.shape_cast %13 : vector<1x1x32x8xf32> to vector<32x8xf32>
    %15 = vector.shape_cast %12 : vector<32x8xf32> to vector<1x1x32x8xf32>
    tpu.vector_store %arg3[%c0_12, %c0_13, %c0_14, %c0_15], %15 {strides = array<i32>} : memref<1x3x32x8xf32, #tpu.memory_space<vmem>>, vector<1x1x32x8xf32>,
    %16 = arith.subf %8, %9 : vector<32x8xf32>
    %cst_16 = arith.constant 5.000000e-01 : f32
    %17 = vector.broadcast %cst_16 : f32 to vector<32x8xf32>
    %18 = arith.mulf %16, %17 : vector<32x8xf32>
    %c0_17 = arith.constant 0 : index
    %c1_18 = arith.constant 1 : index
    %c0_19 = arith.constant 0 : index
    %c0_20 = arith.constant 0 : index
    %19 = vector.load %arg3[%c0_17, %c1_18, %c0_19, %c0_20] : memref<1x3x32x8xf32, #tpu.memory_space<vmem>>, vector<1x1x32x8xf32>
    %20 = vector.shape_cast %19 : vector<1x1x32x8xf32> to vector<32x8xf32>
    %21 = vector.shape_cast %18 : vector<32x8xf32> to vector<1x1x32x8xf32>
    tpu.vector_store %arg3[%c0_17, %c1_18, %c0_19, %c0_20], %21 {strides = array<i32>} : memref<1x3x32x8xf32, #tpu.memory_space<vmem>>, vector<1x1x32x8xf32>,
    %22 = arith.addf %1, %7 : vector<32x8xf32>
    %23 = arith.addf %3, %5 : vector<32x8xf32>
    %24 = arith.subf %22, %23 : vector<32x8xf32>
    %cst_21 = arith.constant 5.000000e-01 : f32
    %25 = vector.broadcast %cst_21 : f32 to vector<32x8xf32>
    %26 = arith.mulf %24, %25 : vector<32x8xf32>
    %c0_22 = arith.constant 0 : index
    %c2_23 = arith.constant 2 : index
    %c0_24 = arith.constant 0 : index
    %c0_25 = arith.constant 0 : index
    %27 = vector.load %arg3[%c0_22, %c2_23, %c0_24, %c0_25] : memref<1x3x32x8xf32, #tpu.memory_space<vmem>>, vector<1x1x32x8xf32>
    %28 = vector.shape_cast %27 : vector<1x1x32x8xf32> to vector<32x8xf32>
    %29 = vector.shape_cast %26 : vector<32x8xf32> to vector<1x1x32x8xf32>
    tpu.vector_store %arg3[%c0_22, %c2_23, %c0_24, %c0_25], %29 {strides = array<i32>} : memref<1x3x32x8xf32, #tpu.memory_space<vmem>>, vector<1x1x32x8xf32>,
    return
  }
  func.func @transform_0(%arg0: i32, %arg1: i32) -> (i32, i32, i32, i32) {
    %c0_i32 = arith.constant 0 : i32
    %c0_i32_0 = arith.constant 0 : i32
    %c0_i32_1 = arith.constant 0 : i32
    return %arg0, %c0_i32, %arg1, %c0_i32_0 : i32, i32, i32, i32
  }
  func.func @transform_1(%arg0: i32, %arg1: i32) -> (i32, i32, i32, i32) {
    %c0_i32 = arith.constant 0 : i32
    %c0_i32_0 = arith.constant 0 : i32
    %c0_i32_1 = arith.constant 0 : i32
    return %arg0, %c0_i32, %arg1, %c0_i32_0 : i32, i32, i32, i32
  }
}

</mosaic_0001>

<bundles_post_ra>
// kernel: tpu_custom_call.1
= control target key start
LH: loop header
LB: loop body
LE: loop exit
PB: predicated region body
PF: predicated region fallthrough
CT: control target
= control target key end

     0   :  { %s407_s6 = smov 0   ;;  %s409_s7 = smov 0   ;;  %s488_s0 = inlined_call_operand.vmem [shape: f32[2,4,32,8], index: 0, kind: input, shape index: {}]   ;;  %s489_s1 = inlined_call_operand.vmem [shape: f32[2,3,32,8], index: 1, kind: output, shape index: {}]  }
   0x1   :  { %s411_s8 = smov 0  }
   0x2 LB: > { %s23_s9 = sadd.s32 1, %s391_s7  ;;  %p321_p0 = scmp.ge.s32.totalorder %s395_s8, 1  ;;  %s395_s8 = sphi %s411_s8, %s11_s8   ;;  %s391_s7 = sphi %s409_s7, %s491_s7   ;;  %s387_s6 = sphi %s407_s6, %s490_s6  }
   0x3   : > { %p25_p1 = scmp.ge.s32.totalorder %s23_s9, 2  ;;  %p108_p2 = scmp.lt.s32.totalorder %s395_s8, 3 }
   0x5   : > { %s493_s9 = smov (%p25_p1, %s23_s9), 0  ;;  %p109_p3 = pnand %p321_p0, %p108_p2 }
   0x6   : > { %p137_p4 = scmp.lt.s32.totalorder (!%p109_p3), %s387_s6, 1  ;;  %vm191_vm0 = vcmask (!%p109_p3), 64512  }
   0x7   : > { %112 = sbr.rel (%p109_p3) target bundleno = 35 (0x23), region = 24 }
   0xe   : > { %s495_s6 = smov (!%p137_p4, %s387_s6), 1 }
   0xf   : > { %s347_s10 = sshll.u32 %s495_s6, 7  ;;  %s348_s14 = smul.u32 96, %s495_s6 }
  0x10   : > { %s431_s13 = scalar_lea.vmem %s488_s0, %s347_s10 }
  0x11   : > { %v156_v0 = vld [vmem:[%s431_s13] sm:$0xff]  ;;  %v157_v5 = vld [vmem:[%s431_s13 + $0x8] sm:$0xff]  ;;  %v158_v11 = vld [vmem:[%s431_s13 + $0x10] sm:$0xff]  ;;  %s452_s17 = scalar_lea.vmem %s489_s1, %s348_s14 }
  0x12   : > { %v325_v1 = vld [vmem:[%s431_s13 + $0x20] sm:$0xff]  ;;  %v326_v6 = vld [vmem:[%s431_s13 + $0x28] sm:$0xff]  ;;  %v327_v15 = vld [vmem:[%s431_s13 + $0x30] sm:$0xff] }
  0x13   : > { %v329_v2 = vld [vmem:[%s431_s13 + $0x40] sm:$0xff]  ;;  %v330_v9 = vld [vmem:[%s431_s13 + $0x48] sm:$0xff]  ;;  %v331_v16 = vld [vmem:[%s431_s13 + $0x50] sm:$0xff] }
  0x14   : > { %v333_v3 = vld [vmem:[%s431_s13 + $0x60] sm:$0xff]  ;;  %v179_v4 = vsub.f32 %v329_v2, %v325_v1  ;;  %v213_v7 = vadd.f32 %v329_v2, %v325_v1  ;;  %v334_v10 = vld [vmem:[%s431_s13 + $0x68] sm:$0xff]  ;;  %v180_v14 = vsub.f32 %v330_v9, %v326_v6  ;;  %v335_v17 = vld [vmem:[%s431_s13 + $0x70] sm:$0xff]  ;;  %v214_v19 = vadd.f32 %v330_v9, %v326_v6 }
  0x15   : > { %v175_v8 = vsub.f32 %v333_v3, %v156_v0  ;;  %v209_v12 = vadd.f32 %v333_v3, %v156_v0  ;;  %v176_v13 = vsub.f32 %v334_v10, %v157_v5  ;;  %v210_v18 = vadd.f32 %v334_v10, %v157_v5  ;;  %v159_v23 = vld [vmem:[%s431_s13 + $0x18] sm:$0xff] }
  0x16   : > { %v177_v21 = vsub.f32 %v335_v17, %v158_v11  ;;  %v181_v22 = vsub.f32 %v331_v16, %v327_v15  ;;  %v328_v24 = vld [vmem:[%s431_s13 + $0x38] sm:$0xff]  ;;  %v211_v45 = vadd.f32 %v335_v17, %v158_v11  ;;  %v215_v46 = vadd.f32 %v331_v16, %v327_v15 }
  0x17   : > { %v183_v20 = vadd.f32 %v179_v4, %v175_v8  ;;  %v332_v25 = vld [vmem:[%s431_s13 + $0x58] sm:$0xff]  ;;  %v196_v26 = vsub.f32 %v175_v8, %v179_v4  ;;  %v184_v27 = vadd.f32 %v180_v14, %v176_v13  ;;  %v197_v30 = vsub.f32 %v176_v13, %v180_v14 }
  0x18   : > { %v336_v28 = vld [vmem:[%s431_s13 + $0x78] sm:$0xff]  ;;  %v182_v29 = vsub.f32 %v332_v25, %v328_v24  ;;  %v217_v31 = vsub.f32 %v209_v12, %v213_v7  ;;  %v185_v33 = vadd.f32 %v181_v22, %v177_v21  ;;  %v198_v38 = vsub.f32 %v177_v21, %v181_v22 }
  0x19   : > { %v187_v32 = vmul.f32 0.5, %v183_v20  ;;  %v178_v34 = vsub.f32 %v336_v28, %v159_v23  ;;  %v200_v35 = vmul.f32 0.5, %v196_v26  ;;  %v188_v36 = vmul.f32 0.5, %v184_v27 }
  0x1a   : > { %v201_v37 = vmul.f32 0.5, %v197_v30  ;;  %v221_v39 = vmul.f32 0.5, %v217_v31  ;;  %v189_v40 = vmul.f32 0.5, %v185_v33  ;;  %v218_v43 = vsub.f32 %v210_v18, %v214_v19 }
  0x1b   : > { %192 = vst.msk [vmem:[%s452_s17] sm:$0xff] %vm191_vm0, %v187_v32  ;;  %v186_v41 = vadd.f32 %v182_v29, %v178_v34  ;;  %337 = vst.msk [vmem:[%s452_s17 + $0x20] sm:$0xff] %vm191_vm0, %v200_v35  ;;  %v199_v42 = vsub.f32 %v178_v34, %v182_v29  ;;  %v202_v44 = vmul.f32 0.5, %v198_v38  ;;  %v212_v47 = vadd.f32 %v336_v28, %v159_v23 }
  0x1c   : > { %193 = vst.msk [vmem:[%s452_s17 + $0x8] sm:$0xff] %vm191_vm0, %v188_v36  ;;  %338 = vst.msk [vmem:[%s452_s17 + $0x28] sm:$0xff] %vm191_vm0, %v201_v37  ;;  %v222_v50 = vmul.f32 0.5, %v218_v43  ;;  %v216_v51 = vadd.f32 %v332_v25, %v328_v24  ;;  %v219_v52 = vsub.f32 %v211_v45, %v215_v46 }
  0x1d   : > { %341 = vst.msk [vmem:[%s452_s17 + $0x40] sm:$0xff] %vm191_vm0, %v221_v39  ;;  %194 = vst.msk [vmem:[%s452_s17 + $0x10] sm:$0xff] %vm191_vm0, %v189_v40  ;;  %v190_v48 = vmul.f32 0.5, %v186_v41  ;;  %v203_v49 = vmul.f32 0.5, %v199_v42 }
  0x1e   : > { %339 = vst.msk [vmem:[%s452_s17 + $0x30] sm:$0xff] %vm191_vm0, %v202_v44  ;;  %342 = vst.msk [vmem:[%s452_s17 + $0x48] sm:$0xff] %vm191_vm0, %v222_v50  ;;  %v220_v53 = vsub.f32 %v212_v47, %v216_v51  ;;  %v223_v54 = vmul.f32 0.5, %v219_v52 }
  0x1f   : > { %195 = vst.msk [vmem:[%s452_s17 + $0x18] sm:$0xff] %vm191_vm0, %v190_v48  ;;  %340 = vst.msk [vmem:[%s452_s17 + $0x38] sm:$0xff] %vm191_vm0, %v203_v49 }
  0x20   : > { %v224_v55 = vmul.f32 0.5, %v220_v53  ;;  %343 = vst.msk [vmem:[%s452_s17 + $0x50] sm:$0xff] %vm191_vm0, %v223_v54 }
  0x22   : > { %344 = vst.msk [vmem:[%s452_s17 + $0x58] sm:$0xff] %vm191_vm0, %v224_v55 }
  0x23 PF: > { %s11_s8 = sadd.s32 1, %s395_s8   ;;  %s490_s6 = smov %s391_s7 }
  0x24   : > { %p8_p5 = scmp.ge.s32.totalorder %s11_s8, 4   ;;  %s491_s7 = smov %s493_s9 }
  0x26   :  { %10 = sbr.rel (!%p8_p5) target bundleno = 2 (0x2), region = 59 }

</bundles_post_ra>
